<compile_context>
chip_gen: v7x
topology: tpu7x:2x2x1
jax: 0.10.0
libtpu: 0.0.40
codegen_flags: <defaults>
</compile_context>

<pallas_src>
import jax
import jax.numpy as jnp
from jax.experimental import pallas as pl
from jax.experimental.pallas import tpu as pltpu


# ---------------------------------------------------------------------------
# Fused forward kernel (single grid step, whole batch):
#   x:       [B, C, HW]   (spatial axis on lanes)
#   w_fused: [C, K_pad]   ((proj @ cls^T) / HW, zero-padded to 128 lanes)
#   b:       [1, K_pad]
#   out:     [B, K_pad] == GAP(x) @ proj @ cls^T + b
# ---------------------------------------------------------------------------
def _fused_hybrid_kernel(x_ref, wf_ref, b_ref, o_ref):
    # Spatial sum over the lane axis (XLU lane-reduce); the 1/HW of the
    # global-average-pool is already folded into w_fused.
    pooled = jnp.sum(x_ref[...], axis=2)                      # [B, C]
    C = pooled.shape[1]
    # Tiny K=C=4 contraction as VPU broadcast-FMAs (skip MXU fill/drain).
    acc = pooled[:, 0:1] * wf_ref[0:1, :] + b_ref[...]        # [B, K_pad]
    for c in range(1, C):                                     # unrolled, C=4
        acc = acc + pooled[:, c:c + 1] * wf_ref[c:c + 1, :]
    o_ref[...] = acc                                          # lane-dense vst


def custom_hybrid_model(x_nchw, params, num_classes):
    B, C, H, W = x_nchw.shape
    HW = H * W
    # Free reshape (no transpose, no HBM copy): NCHW -> [B, C, H*W].
    x = x_nchw.reshape(B, C, HW)

    w_fused = params["w_fused"]        # [C, K_pad]
    b_cls = params["b_cls"]            # [1, K_pad]
    K_pad = w_fused.shape[1]

    out_padded = pl.pallas_call(
        _fused_hybrid_kernel,
        out_shape=jax.ShapeDtypeStruct((B, K_pad), jnp.float32),
        grid_spec=pltpu.PrefetchScalarGridSpec(
            num_scalar_prefetch=0,
            grid=(1,),
            in_specs=[
                pl.BlockSpec((B, C, HW), lambda i: (0, 0, 0)),
                pl.BlockSpec((C, K_pad), lambda i: (0, 0)),
                pl.BlockSpec((1, K_pad), lambda i: (0, 0)),
            ],
            out_specs=pl.BlockSpec((B, K_pad), lambda i: (0, 0)),
        ),
        compiler_params=pltpu.CompilerParams(
            dimension_semantics=("arbitrary",)),
    )(x, w_fused, b_cls)

    # Drop the padded lanes; return [B, num_classes].
    return out_padded[:, :num_classes]


def _round_up(n, m):
    return ((n + m - 1) // m) * m


def init_params(key, C, F_swin, F_eff, num_classes, spatial_hw):
    k1, k2, k3, k4 = jax.random.split(key, 4)
    # Backbone-stub projections (stand-ins for the timm backbones).
    w_swin_proj = jax.random.normal(k1, (C, F_swin), jnp.float32) * 0.02
    w_eff_proj = jax.random.normal(k2, (C, F_eff), jnp.float32) * 0.02
    # nn.Linear(F_swin + F_eff, num_classes): weight [K, F1+F2], bias [K]
    w_cls = jax.random.normal(k3, (num_classes, F_swin + F_eff), jnp.float32) * 0.02
    b_cls = jax.random.normal(k4, (num_classes,), jnp.float32) * 0.02

    K_pad = _round_up(num_classes, 128)   # lane-dense output store

    # Never-materialized concat: [w_swin | w_eff] @ W_cls^T, then fold the
    # 1/HW mean-pool scale and zero-pad columns to K_pad.
    w_proj = jnp.concatenate([w_swin_proj, w_eff_proj], axis=1)   # [C, F1+F2]
    w_fused_raw = w_proj @ jnp.transpose(w_cls)                   # [C, K]
    w_fused = jnp.zeros((C, K_pad), jnp.float32)
    w_fused = w_fused.at[:, :num_classes].set(w_fused_raw / float(spatial_hw))

    b_pad = jnp.zeros((1, K_pad), jnp.float32)
    b_pad = b_pad.at[0, :num_classes].set(b_cls)

    return {
        "w_fused": w_fused,
        "b_cls": b_pad,
        # Raw (unpadded, unfused) weights retained only for the pure-JAX
        # reference self-check.
        "_raw": {
            "w_swin_proj": w_swin_proj,
            "w_eff_proj": w_eff_proj,
            "w_cls": w_cls,
            "b_cls": b_cls,
        },
    }


if __name__ == "__main__":
    # Small shapes consistent with the forward pass:
    #   x: [B=2, C=4, H=16, W=16]  (NCHW, like the PyTorch module)
    #   stand-in feature widths: swin=32, efficientnet=64; num_classes=8
    B, C, H, W = 2, 4, 16, 16
    F_SWIN, F_EFF, NUM_CLASSES = 32, 64, 8

    key = jax.random.PRNGKey(0)
    kx, kp = jax.random.split(key)
    x = jax.random.normal(kx, (B, C, H, W), jnp.float32)
    params = init_params(kp, C, F_SWIN, F_EFF, NUM_CLASSES, spatial_hw=H * W)

    out = custom_hybrid_model(x, params, NUM_CLASSES)
    out = jax.block_until_ready(out)
    assert out.shape == (B, NUM_CLASSES), out.shape

    # Pure-JAX reference of the same (stub) computation, with the original
    # unfused / unpadded weights and explicit concat, mirroring the PyTorch
    # forward: backbone features -> cat -> classifier.
    raw = params["_raw"]
    pooled = jnp.mean(x.reshape(B, C, H * W), axis=2)            # [B, C]
    f_swin = pooled @ raw["w_swin_proj"]                         # [B, F1]
    f_eff = pooled @ raw["w_eff_proj"]                           # [B, F2]
    ref = jnp.concatenate([f_swin, f_eff], axis=1) @ raw["w_cls"].T \
        + raw["b_cls"][None, :]
    assert jnp.allclose(out, ref, atol=1e-5, rtol=1e-5)

    print("KERNEL_OK")
</pallas_src>

<mosaic_0001>
module attributes {stable_mosaic.version = 11 : i64} {
  func.func @_fused_hybrid_kernel(%arg0: i32, %arg1: memref<2x4x256xf32, #tpu.memory_space<vmem>>, %arg2: memref<4x128xf32, #tpu.memory_space<vmem>>, %arg3: memref<1x128xf32, #tpu.memory_space<vmem>>, %arg4: memref<2x128xf32, #tpu.memory_space<vmem>>) attributes {dimension_semantics = [#tpu.dimension_semantics<arbitrary>], iteration_bounds = array<i64: 1>, scalar_prefetch = 0 : i64, scratch_operands = 0 : i64, tpu.core_type = #tpu.core_type<tc>, window_params = [{pipeline_mode = #tpu.pipeline_mode<synchronous>, transform_indices = @transform_0, window_bounds = array<i64: 2, 4, 256>}, {pipeline_mode = #tpu.pipeline_mode<synchronous>, transform_indices = @transform_1, window_bounds = array<i64: 4, 128>}, {pipeline_mode = #tpu.pipeline_mode<synchronous>, transform_indices = @transform_2, window_bounds = array<i64: 1, 128>}, {pipeline_mode = #tpu.pipeline_mode<synchronous>, transform_indices = @transform_3, window_bounds = array<i64: 2, 128>}]} {
    %c0 = arith.constant 0 : index
    %c0_0 = arith.constant 0 : index
    %c0_1 = arith.constant 0 : index
    %0 = vector.load %arg1[%c0, %c0_0, %c0_1] : memref<2x4x256xf32, #tpu.memory_space<vmem>>, vector<2x4x256xf32>
    %cst = arith.constant dense<0.000000e+00> : vector<2x4xf32>
    %1 = vector.multi_reduction <add>, %0, %cst [2] : vector<2x4x256xf32> to vector<2x4xf32>
    %2 = vector.extract_strided_slice %1 {offsets = [0, 0], sizes = [2, 1], strides = [1, 1]} : vector<2x4xf32> to vector<2x1xf32>
    %c0_2 = arith.constant 0 : index
    %c0_3 = arith.constant 0 : index
    %3 = vector.load %arg2[%c0_2, %c0_3] : memref<4x128xf32, #tpu.memory_space<vmem>>, vector<1x128xf32>
    %4 = vector.broadcast %2 : vector<2x1xf32> to vector<2x128xf32>
    %5 = vector.broadcast %3 : vector<1x128xf32> to vector<2x128xf32>
    %6 = arith.mulf %4, %5 : vector<2x128xf32>
    %c0_4 = arith.constant 0 : index
    %c0_5 = arith.constant 0 : index
    %7 = vector.load %arg3[%c0_4, %c0_5] : memref<1x128xf32, #tpu.memory_space<vmem>>, vector<1x128xf32>
    %8 = vector.broadcast %7 : vector<1x128xf32> to vector<2x128xf32>
    %9 = arith.addf %6, %8 : vector<2x128xf32>
    %10 = vector.extract_strided_slice %1 {offsets = [0, 1], sizes = [2, 1], strides = [1, 1]} : vector<2x4xf32> to vector<2x1xf32>
    %c1 = arith.constant 1 : index
    %c0_6 = arith.constant 0 : index
    %11 = vector.load %arg2[%c1, %c0_6] : memref<4x128xf32, #tpu.memory_space<vmem>>, vector<1x128xf32>
    %12 = vector.broadcast %10 : vector<2x1xf32> to vector<2x128xf32>
    %13 = vector.broadcast %11 : vector<1x128xf32> to vector<2x128xf32>
    %14 = arith.mulf %12, %13 : vector<2x128xf32>
    %15 = arith.addf %9, %14 : vector<2x128xf32>
    %16 = vector.extract_strided_slice %1 {offsets = [0, 2], sizes = [2, 1], strides = [1, 1]} : vector<2x4xf32> to vector<2x1xf32>
    %c2 = arith.constant 2 : index
    %c0_7 = arith.constant 0 : index
    %17 = vector.load %arg2[%c2, %c0_7] : memref<4x128xf32, #tpu.memory_space<vmem>>, vector<1x128xf32>
    %18 = vector.broadcast %16 : vector<2x1xf32> to vector<2x128xf32>
    %19 = vector.broadcast %17 : vector<1x128xf32> to vector<2x128xf32>
    %20 = arith.mulf %18, %19 : vector<2x128xf32>
    %21 = arith.addf %15, %20 : vector<2x128xf32>
    %22 = vector.extract_strided_slice %1 {offsets = [0, 3], sizes = [2, 1], strides = [1, 1]} : vector<2x4xf32> to vector<2x1xf32>
    %c3 = arith.constant 3 : index
    %c0_8 = arith.constant 0 : index
    %23 = vector.load %arg2[%c3, %c0_8] : memref<4x128xf32, #tpu.memory_space<vmem>>, vector<1x128xf32>
    %24 = vector.broadcast %22 : vector<2x1xf32> to vector<2x128xf32>
    %25 = vector.broadcast %23 : vector<1x128xf32> to vector<2x128xf32>
    %26 = arith.mulf %24, %25 : vector<2x128xf32>
    %27 = arith.addf %21, %26 : vector<2x128xf32>
    %c0_9 = arith.constant 0 : index
    %c0_10 = arith.constant 0 : index
    %28 = vector.load %arg4[%c0_9, %c0_10] : memref<2x128xf32, #tpu.memory_space<vmem>>, vector<2x128xf32>
    tpu.vector_store %arg4[%c0_9, %c0_10], %27 {strides = array<i32>} : memref<2x128xf32, #tpu.memory_space<vmem>>, vector<2x128xf32>,
    return
  }
  func.func @transform_0(%arg0: i32) -> (i32, i32, i32) {
    %c0_i32 = arith.constant 0 : i32
    %c0_i32_0 = arith.constant 0 : i32
    %c0_i32_1 = arith.constant 0 : i32
    %c0_i32_2 = arith.constant 0 : i32
    return %c0_i32, %c0_i32_0, %c0_i32_1 : i32, i32, i32
  }
  func.func @transform_1(%arg0: i32) -> (i32, i32) {
    %c0_i32 = arith.constant 0 : i32
    %c0_i32_0 = arith.constant 0 : i32
    %c0_i32_1 = arith.constant 0 : i32
    return %c0_i32, %c0_i32_0 : i32, i32
  }
  func.func @transform_2(%arg0: i32) -> (i32, i32) {
    %c0_i32 = arith.constant 0 : i32
    %c0_i32_0 = arith.constant 0 : i32
    %c0_i32_1 = arith.constant 0 : i32
    return %c0_i32, %c0_i32_0 : i32, i32
  }
  func.func @transform_3(%arg0: i32) -> (i32, i32) {
    %c0_i32 = arith.constant 0 : i32
    %c0_i32_0 = arith.constant 0 : i32
    %c0_i32_1 = arith.constant 0 : i32
    return %c0_i32, %c0_i32_0 : i32, i32
  }
}

</mosaic_0001>

<bundles_post_ra>
// kernel: tpu_custom_call.1
= control target key start
LH: loop header
LB: loop body
LE: loop exit
PB: predicated region body
PF: predicated region fallthrough
CT: control target
= control target key end

     0   :  { %8 = vsyncpa [#allocation3], 0  ;;  %s1872_s0 = inlined_call_operand.hbm [shape: f32[2,4,256], index: 0, kind: input, shape index: {}]   ;;  %s1873_s1 = inlined_call_operand.hbm [shape: f32[4,128], index: 1, kind: input, shape index: {}]   ;;  %s1874_s2 = inlined_call_operand.vmem [shape: f32[1,128], index: 2, kind: input, shape index: {}]   ;;  %s1875_s3 = inlined_call_operand.hbm [shape: f32[2,128], index: 3, kind: output, shape index: {}]  }
   0x1   :  { %9 = vsyncpa [#allocation6], 0 }
   0x2   :  { %10 = vsyncpa [#allocation4], 0  ;;  %s1198_s12 = smov [#allocation2]   ;;  %s1126_s16 = scalar_lea.hbm %s1872_s0, 256 }
   0x3   :  { %s16_s13 = sshll.u32 %s1198_s12, 4  ;;  %p1127_p0 = scmp.ne.s32.totalorder %s1872_s0, %s1126_s16  ;;  %s17_s13 = int_to_ptr.vmem [resolvable:$true] %s16_s13 }
   0x4   :  { %p1130_p1 = scmp.lt.u32.totalorder %s1126_s16, %s1872_s0 }
   0x6   :  { %p1132_p2 = pnand %p1130_p1, %p1127_p0 }
   0x8   :  { %1135 = shalt.err (!%p1132_p2)
}
   0x9   :  { %s1136_s21 = scalar_lea.vmem %s17_s13, 256  ;;  %p1141_p4 = scmp.lt.s32.totalorder %s17_s13, %s17_s13 }
   0xa   :  { %p1137_p3 = scmp.ne.s32.totalorder %s17_s13, %s1136_s21  ;;  %p1142_p5 = scmp.lt.s32.totalorder %s1136_s21, %s1136_s21 }
   0xc   :  { %p1143_p6 = por %p1142_p5, %p1141_p4 }
   0xe   :  { %p1144_p7 = pnand %p1143_p6, %p1137_p3 }
  0x10   :  { %1147 = shalt.err (!%p1144_p7)
}
  0x11   :  { %s1199_s22 = smov 128   ;;  %s1200_s23 = smov 8  }
  0x12   :  { %22 = dma.hbm_to_vmem [thread:$0]  %s1872_s0, 256, %s17_s13, [#allocation3], %s1199_s22, %s1199_s22, %s1200_s23  }
  0x13   :  { %s1201_s26 = smov [#allocation5]   ;;  %s1148_s30 = scalar_lea.hbm %s1873_s1, 64 }
  0x14   :  { %s29_s27 = sshll.u32 %s1201_s26, 4  ;;  %p1149_p8 = scmp.ne.s32.totalorder %s1873_s1, %s1148_s30  ;;  %s30_s27 = int_to_ptr.vmem [resolvable:$true] %s29_s27 }
  0x15   :  { %p1152_p9 = scmp.lt.u32.totalorder %s1148_s30, %s1873_s1 }
  0x17   :  { %p1154_p10 = pnand %p1152_p9, %p1149_p8 }
  0x19   :  { %1157 = shalt.err (!%p1154_p10)
}
  0x1a   :  { %s1158_s8 = scalar_lea.vmem %s30_s27, 64  ;;  %p1163_p12 = scmp.lt.s32.totalorder %s30_s27, %s30_s27 }
  0x1b   :  { %p1159_p11 = scmp.ne.s32.totalorder %s30_s27, %s1158_s8  ;;  %p1164_p13 = scmp.lt.s32.totalorder %s1158_s8, %s1158_s8 }
  0x1d   :  { %p1165_p0 = por %p1164_p13, %p1163_p12 }
  0x1f   :  { %p1166_p1 = pnand %p1165_p0, %p1159_p11 }
  0x21   :  { %1169 = shalt.err (!%p1166_p1)
}
  0x22   :  { %32 = dma.hbm_to_vmem [thread:$0]  %s1873_s1, 64, %s30_s27, [#allocation6]  }
  0x23   :  { %1192 = dma.done.wait [#allocation3], 256  }
  0x24   :  { %1193 = vsyncadd [#allocation3], 4294967040 }
  0x25   :  { %1194 = dma.done.wait [#allocation6], 64  }
  0x26   :  { %1195 = vsyncadd [#allocation6], 4294967232  ;;  %vm49_vm0 = vcmask 1043456   ;;  %v1111_v0 = vld [vmem:[#allocation5] ss:$0 sm:$0xff]  ;;  %v41_v1 = vld [vmem:[#allocation2] sm:$0xff]  ;;  %v1876_v28 = vlaneseq }
  0x27   :  { %v42_v2 = vld [vmem:[#allocation2 + $0x8] sm:$0xff]  ;;  %75 = vbcast.lane.b32.xlu1 %v1111_v0, 256  ;;  %v45_v3 = vcombine.high %v41_v1, %v41_v1  ;;  %v50_v4 = vsel %vm49_vm0, %v41_v1, 0.0  ;;  %v1112_v11 = vld [vmem:[%s1874_s2] ss:$0 sm:$0xff]  ;;  %v1202_v19 = vmov 0  }
  0x28   :  { %v46_v5 = vcombine.high %v42_v2, %v42_v2  ;;  %v55_v7 = vsel %vm49_vm0, %v42_v2, 0.0  ;;  %v1113_v12 = vld [vmem:[#allocation5 + $0x1] ss:$0 sm:$0xff]  ;;  %v1114_v13 = vld [vmem:[#allocation5 + $0x2] ss:$0 sm:$0xff]  ;;  %1122 = vset.pattern.permute.xlu1 %v1202_v19  ;;  %1123 = vset.pattern.permute.xlu0 %v1202_v19  ;;  %v1280_v31 = vshrl.u32 %v1876_v28, 7 }
  0x29   :  { %v51_v6 = vsel %vm49_vm0, %v45_v3, 0.0  ;;  %v1115_v21 = vld [vmem:[#allocation5 + $0x3] ss:$0 sm:$0xff]  ;;  %vm912_vm1 = vcmask 130112   ;;  %vm919_vm2 = vcmask 195712   ;;  %vm926_vm3 = vcmask 261312  }
  0x2a   :  { %v56_v8 = vsel %vm49_vm0, %v46_v5, 0.0  ;;  %v52_v9 = vadd.f32 %v51_v6, %v50_v4  ;;  %v63_v34 = vsub.s32 0, %v1280_v31  ;;  %v305_v54 = vsub.s32 1, %v1280_v31  ;;  %s1203_s2 = smov [#allocation7]  }
  0x2b   :  { %79 = vbcast.lane.b32.xlu1 %v1111_v0, 264  ;;  %v57_v10 = vadd.f32 %v56_v8, %v55_v7  ;;  %vm933_vm4 = vcmask 326912   ;;  %vm940_vm5 = vcmask 392512   ;;  %vm947_vm6 = vcmask 458112   ;;  %s1101_s11 = sshll.u32 %s1203_s2, 4  ;;  %s1102_s11 = int_to_ptr.vmem [resolvable:$true] %s1101_s11 }
  0x2c   :  { %53 = vadd.xlane.f32.xlu0 %v52_v9  ;;  %vm954_vm7 = vcmask 523712   ;;  %vm961_vm8 = vcmask 589312   ;;  %vm968_vm9 = vcmask 654912   ;;  %vm975_vm10 = vcmask 720512   ;;  %s1170_s12 = scalar_lea.vmem %s1102_s11, 32  ;;  %p1175_p3 = scmp.lt.s32.totalorder %s1102_s11, %s1102_s11 }
  0x2d   :  { %vm982_vm11 = vcmask 786112   ;;  %vm989_vm12 = vcmask 851712   ;;  %vm996_vm13 = vcmask 917312   ;;  %vm1003_vm14 = vcmask 982912   ;;  %p1171_p2 = scmp.ne.s32.totalorder %s1102_s11, %s1170_s12  ;;  %p1176_p4 = scmp.lt.s32.totalorder %s1170_s12, %s1170_s12 }
  0x2e   :  { %vm1010_vm15 = vcmask 1048512   ;;  %vm1091_vm0 = vcmask 1041409  }
  0x2f   :  { %87 = vbcast.lane.b32.xlu1 %v1111_v0, 280  ;;  %p1177_p5 = por %p1176_p4, %p1175_p3 }
  0x30   :  { %58 = vadd.xlane.f32.xlu0 %v57_v10 }
  0x31   :  { %p1178_p6 = pnand %p1177_p5, %p1171_p2 }
  0x33   :  { %91 = vbcast.lane.b32.xlu1 %v1111_v0, 288 }
  0x37   :  { %95 = vbcast.lane.b32.xlu1 %v1111_v0, 296 }
  0x3b   :  { %99 = vbcast.lane.b32.xlu1 %v1111_v0, 304 }
  0x3f   :  { %103 = vbcast.lane.b32.xlu1 %v1111_v0, 312 }
  0x43   :  { %107 = vbcast.lane.b32.xlu1 %v1111_v0, 320 }
  0x46   :  { %83 = vbcast.lane.b32.xlu0 %v1111_v0, 272 }
  0x47   :  { %115 = vbcast.lane.b32.xlu1 %v1111_v0, 336 }
  0x4a   :  { %111 = vbcast.lane.b32.xlu0 %v1111_v0, 328 }
  0x4b   :  { %123 = vbcast.lane.b32.xlu1 %v1111_v0, 352 }
  0x4e   :  { %119 = vbcast.lane.b32.xlu0 %v1111_v0, 344 }
  0x4f   :  { %131 = vbcast.lane.b32.xlu1 %v1111_v0, 368 }
  0x52   :  { %127 = vbcast.lane.b32.xlu0 %v1111_v0, 360 }
  0x53   :  { %192 = vbcast.lane.b32.xlu1 %v1112_v11, 256 }
  0x56   :  { %135 = vbcast.lane.b32.xlu0 %v1111_v0, 376 }
  0x57   :  { %200 = vbcast.lane.b32.xlu1 %v1112_v11, 272 }
  0x5a   :  { %196 = vbcast.lane.b32.xlu0 %v1112_v11, 264 }
  0x5b   :  { %208 = vbcast.lane.b32.xlu1 %v1112_v11, 288 }
  0x5e   :  { %204 = vbcast.lane.b32.xlu0 %v1112_v11, 280 }
  0x5f   :  { %216 = vbcast.lane.b32.xlu1 %v1112_v11, 304 }
  0x62   :  { %212 = vbcast.lane.b32.xlu0 %v1112_v11, 296 }
  0x63   :  { %224 = vbcast.lane.b32.xlu1 %v1112_v11, 320 }
  0x66   :  { %220 = vbcast.lane.b32.xlu0 %v1112_v11, 312 }
  0x67   :  { %232 = vbcast.lane.b32.xlu1 %v1112_v11, 336 }
  0x6a   :  { %228 = vbcast.lane.b32.xlu0 %v1112_v11, 328 }
  0x6b   :  { %240 = vbcast.lane.b32.xlu1 %v1112_v11, 352 }
  0x6e   :  { %236 = vbcast.lane.b32.xlu0 %v1112_v11, 344 }
  0x6f   :  { %248 = vbcast.lane.b32.xlu1 %v1112_v11, 368 }
  0x72   :  { %244 = vbcast.lane.b32.xlu0 %v1112_v11, 360 }
  0x73   :  { %317 = vbcast.lane.b32.xlu1 %v1113_v12, 256 }
  0x76   :  { %252 = vbcast.lane.b32.xlu0 %v1112_v11, 376 }
  0x77   :  { %325 = vbcast.lane.b32.xlu1 %v1113_v12, 272 }
  0x7a   :  { %321 = vbcast.lane.b32.xlu0 %v1113_v12, 264 }
  0x7b   :  { %333 = vbcast.lane.b32.xlu1 %v1113_v12, 288 }
  0x7e   :  { %329 = vbcast.lane.b32.xlu0 %v1113_v12, 280 }
  0x7f   :  { %341 = vbcast.lane.b32.xlu1 %v1113_v12, 304 }
  0x82   :  { %337 = vbcast.lane.b32.xlu0 %v1113_v12, 296 }
  0x83   :  { %349 = vbcast.lane.b32.xlu1 %v1113_v12, 320 }
  0x86   :  { %345 = vbcast.lane.b32.xlu0 %v1113_v12, 312 }
  0x87   :  { %357 = vbcast.lane.b32.xlu1 %v1113_v12, 336 }
  0x8a   :  { %353 = vbcast.lane.b32.xlu0 %v1113_v12, 328 }
  0x8b   :  { %365 = vbcast.lane.b32.xlu1 %v1113_v12, 352 }
  0x8e   :  { %361 = vbcast.lane.b32.xlu0 %v1113_v12, 344 }
  0x8f   :  { %373 = vbcast.lane.b32.xlu1 %v1113_v12, 368 }
  0x92   :  { %369 = vbcast.lane.b32.xlu0 %v1113_v12, 360 }
  0x93   :  { %474 = vbcast.lane.b32.xlu1 %v1114_v13, 256 }
  0x96   :  { %377 = vbcast.lane.b32.xlu0 %v1113_v12, 376 }
  0x97   :  { %482 = vbcast.lane.b32.xlu1 %v1114_v13, 272 }
  0x99   :  { %v1251_v14 = vpop.permute.xlu1 %75 }
  0x9a   :  { %478 = vbcast.lane.b32.xlu0 %v1114_v13, 264 }
  0x9b   :  { %490 = vbcast.lane.b32.xlu1 %v1114_v13, 288 }
  0x9d   :  { %v1253_v15 = vpop.permute.xlu1 %79 }
  0x9e   :  { %486 = vbcast.lane.b32.xlu0 %v1114_v13, 280 }
  0x9f   :  { %498 = vbcast.lane.b32.xlu1 %v1114_v13, 304 }
  0xa1   :  { %v1255_v16 = vpop.permute.xlu1 %87 }
  0xa2   :  { %494 = vbcast.lane.b32.xlu0 %v1114_v13, 296 }
  0xa3   :  { %506 = vbcast.lane.b32.xlu1 %v1114_v13, 320 }
  0xa5   :  { %v1257_v17 = vpop.permute.xlu1 %91 }
  0xa6   :  { %502 = vbcast.lane.b32.xlu0 %v1114_v13, 312 }
  0xa7   :  { %514 = vbcast.lane.b32.xlu1 %v1114_v13, 336 }
  0xa9   :  { %v1259_v18 = vpop.permute.xlu1 %95 }
  0xaa   :  { %510 = vbcast.lane.b32.xlu0 %v1114_v13, 328 }
  0xab   :  { %522 = vbcast.lane.b32.xlu1 %v1114_v13, 352 }
  0xad   :  { %v1261_v20 = vpop.permute.xlu1 %99 }
  0xae   :  { %518 = vbcast.lane.b32.xlu0 %v1114_v13, 344 }
  0xaf   :  { %530 = vbcast.lane.b32.xlu1 %v1114_v13, 368 }
  0xb1   :  { %v1263_v22 = vpop.permute.xlu1 %103 }
  0xb2   :  { %526 = vbcast.lane.b32.xlu0 %v1114_v13, 360 }
  0xb3   :  { %631 = vbcast.lane.b32.xlu1 %v1115_v21, 256 }
  0xb5   :  { %v1265_v23 = vpop.permute.xlu1 %107 }
  0xb6   :  { %534 = vbcast.lane.b32.xlu0 %v1114_v13, 376 }
  0xb7   :  { %639 = vbcast.lane.b32.xlu1 %v1115_v21, 272 }
  0xb9   :  { %v1267_v24 = vpop.permute.xlu1 %115  ;;  %v1269_v25 = vpop.xlane.xlu0 %53 }
  0xba   :  { %635 = vbcast.lane.b32.xlu0 %v1115_v21, 264  ;;  %v1292_v37 = vrot.slane %v1269_v25, %v63_v34  ;;  %v1347_v6 = vrot.slane %v1269_v25, %v305_v54 }
  0xbb   :  { %647 = vbcast.lane.b32.xlu1 %v1115_v21, 288 }
  0xbc   :  { %v157_v4 = vmul.f32 %v1257_v17, %v1292_v37 }
  0xbd   :  { %v1271_v26 = vpop.permute.xlu1 %123  ;;  %v1273_v27 = vpop.xlane.xlu0 %58 }
  0xbe   :  { %1878 = vst [vmem:[#allocation11_spill] sm:$0xff] %v1273_v27  ;;  %643 = vbcast.lane.b32.xlu0 %v1115_v21, 280  ;;  %v1307_v50 = vrot.slane %v1273_v27, %v63_v34  ;;  %v1320_v56 = vrot.slane %v1273_v27, %v305_v54 }
  0xbf   :  { %655 = vbcast.lane.b32.xlu1 %v1115_v21, 304 }
  0xc0   :  { %v169_v57 = vmul.f32 %v1251_v14, %v1307_v50  ;;  %v173_v5 = vmul.f32 %v1257_v17, %v1307_v50  ;;  %v159_v17 = vmul.f32 %v1261_v20, %v1292_v37 }
  0xc1   :  { %v1275_v29 = vpop.permute.xlu1 %131  ;;  %v1277_v30 = vpop.permute.xlu0 %83 }
  0xc2   :  { %651 = vbcast.lane.b32.xlu0 %v1115_v21, 296  ;;  %v167_v51 = vmul.f32 %v1275_v29, %v1292_v37  ;;  %v171_v62 = vmul.f32 %v1277_v30, %v1307_v50 }
  0xc3   :  { %663 = vbcast.lane.b32.xlu1 %v1115_v21, 320 }
  0xc5   :  { %v1282_v32 = vpop.permute.xlu1 %192  ;;  %v1284_v33 = vpop.permute.xlu0 %111 }
  0xc6   :  { %659 = vbcast.lane.b32.xlu0 %v1115_v21, 312  ;;  %v286_v60 = vadd.f32 %v1282_v32, %v169_v57 }
  0xc7   :  { %671 = vbcast.lane.b32.xlu1 %v1115_v21, 336 }
  0xc9   :  { %v1287_v35 = vpop.permute.xlu1 %200  ;;  %v1289_v36 = vpop.permute.xlu0 %119 }
  0xca   :  { %667 = vbcast.lane.b32.xlu0 %v1115_v21, 328  ;;  %v288_v2 = vadd.f32 %v1287_v35, %v171_v62 }
  0xcb   :  { %679 = vbcast.lane.b32.xlu1 %v1115_v21, 352 }
  0xcd   :  { %v209_v38 = vpop.permute.xlu1 %208  ;;  %v128_v39 = vpop.permute.xlu0 %127 }
  0xce   :  { %v166_v40 = vmul.f32 %v128_v39, %v1292_v37  ;;  %675 = vbcast.lane.b32.xlu0 %v1115_v21, 344  ;;  %v182_v7 = vmul.f32 %v128_v39, %v1307_v50  ;;  %v274_v9 = vadd.f32 %v209_v38, %v157_v4  ;;  %v290_v10 = vadd.f32 %v209_v38, %v173_v5 }
  0xcf   :  { %687 = vbcast.lane.b32.xlu1 %v1115_v21, 368  ;;  %v175_v39 = vmul.f32 %v1261_v20, %v1307_v50  ;;  %v161_v20 = vmul.f32 %v1265_v23, %v1292_v37  ;;  %v170_v5 = vmul.f32 %v1253_v15, %v1307_v50 }
  0xd1   :  { %v217_v41 = vpop.permute.xlu1 %216  ;;  %v136_v42 = vpop.permute.xlu0 %135 }
  0xd2   :  { %v168_v43 = vmul.f32 %v136_v42, %v1292_v37  ;;  %683 = vbcast.lane.b32.xlu0 %v1115_v21, 360  ;;  %v276_v57 = vadd.f32 %v217_v41, %v159_v17  ;;  %v163_v17 = vmul.f32 %v1267_v24, %v1292_v37 }
  0xd5   :  { %v225_v44 = vpop.permute.xlu1 %224  ;;  %v1296_v45 = vpop.permute.xlu0 %196 }
  0xd6   :  { %691 = vbcast.lane.b32.xlu0 %v1115_v21, 376 }
  0xd9   :  { %v1298_v46 = vpop.permute.xlu1 %232  ;;  %v1300_v47 = vpop.permute.xlu0 %204 }
  0xdd   :  { %v1302_v48 = vpop.permute.xlu1 %240  ;;  %v1304_v49 = vpop.permute.xlu0 %212 }
  0xe1   :  { %v1311_v52 = vpop.permute.xlu1 %248  ;;  %v1313_v53 = vpop.permute.xlu0 %220 }
  0xe2   :  { %v1317_v55 = vadd.f32 %v1311_v52, %v167_v51  ;;  %v184_v51 = vmul.f32 %v136_v42, %v1307_v50  ;;  %v177_v42 = vmul.f32 %v1265_v23, %v1307_v50 }
  0xe5   :  { %v1324_v58 = vpop.permute.xlu1 %317  ;;  %v1326_v59 = vpop.permute.xlu0 %228 }
  0xe6   :  { %v411_v61 = vmul.f32 %v1324_v58, %v1320_v56 }
  0xe8   :  { %v1333_v63 = vadd.f32 %v411_v61, %v286_v60  ;;  %v292_v60 = vadd.f32 %v217_v41, %v175_v39  ;;  %v179_v39 = vmul.f32 %v1267_v24, %v1307_v50 }
  0xe9   :  { %v1335_v0 = vpop.permute.xlu1 %325  ;;  %v1337_v1 = vpop.permute.xlu0 %236 }
  0xea   :  { %v413_v3 = vmul.f32 %v1335_v0, %v1320_v56 }
  0xec   :  { %v1350_v8 = vadd.f32 %v413_v3, %v288_v2 }
  0xed   :  { %v334_v11 = vpop.permute.xlu1 %333  ;;  %v245_v12 = vpop.permute.xlu0 %244 }
  0xee   :  { %v399_v13 = vmul.f32 %v334_v11, %v1347_v6  ;;  %v415_v19 = vmul.f32 %v334_v11, %v1320_v56  ;;  %v1354_v21 = vadd.f32 %v245_v12, %v166_v40  ;;  %v1356_v34 = vadd.f32 %v245_v12, %v182_v7 }
  0xef   :  { %v287_v12 = vadd.f32 %v1296_v45, %v170_v5 }
  0xf0   :  { %v1363_v54 = vadd.f32 %v399_v13, %v274_v9  ;;  %v1365_v38 = vadd.f32 %v415_v19, %v290_v10  ;;  %v278_v9 = vadd.f32 %v225_v44, %v161_v20  ;;  %v294_v10 = vadd.f32 %v225_v44, %v177_v42 }
  0xf1   :  { %v342_v61 = vpop.permute.xlu1 %341  ;;  %v253_v62 = vpop.permute.xlu0 %252  ;;  %v172_v44 = vmul.f32 %v1255_v16, %v1307_v50 }
  0xf2   :  { %v401_v40 = vmul.f32 %v342_v61, %v1347_v6  ;;  %v417_v2 = vmul.f32 %v342_v61, %v1320_v56  ;;  %v1369_v3 = vadd.f32 %v253_v62, %v168_v43  ;;  %v1371_v4 = vadd.f32 %v253_v62, %v184_v51 }
  0xf3   :  { %v280_v61 = vadd.f32 %v1298_v46, %v163_v17  ;;  %v296_v62 = vadd.f32 %v1298_v46, %v179_v39  ;;  %v289_v20 = vadd.f32 %v1300_v47, %v172_v44  ;;  %v174_v46 = vmul.f32 %v1259_v18, %v1307_v50 }
  0xf4   :  { %v1379_v41 = vadd.f32 %v401_v40, %v276_v57  ;;  %v1381_v7 = vadd.f32 %v417_v2, %v292_v60 }
  0xf5   :  { %v350_v11 = vpop.permute.xlu1 %349  ;;  %v1383_v43 = vpop.permute.xlu0 %321  ;;  %v291_v44 = vadd.f32 %v1304_v49, %v174_v46 }
  0xf6   :  { %v403_v13 = vmul.f32 %v350_v11, %v1347_v6  ;;  %v419_v19 = vmul.f32 %v350_v11, %v1320_v56  ;;  %v412_v23 = vmul.f32 %v1383_v43, %v1320_v56 }
  0xf8   :  { %v1396_v51 = vadd.f32 %v403_v13, %v278_v9  ;;  %v1398_v57 = vadd.f32 %v419_v19, %v294_v10  ;;  %v1400_v60 = vadd.f32 %v412_v23, %v287_v12  ;;  %v165_v9 = vmul.f32 %v1271_v26, %v1292_v37 }
  0xf9   :  { %v358_v40 = vpop.permute.xlu1 %357  ;;  %v1404_v2 = vpop.permute.xlu0 %329  ;;  %v181_v10 = vmul.f32 %v1271_v26, %v1307_v50 }
  0xfa   :  { %1879 = vst [vmem:[#allocation12_spill] sm:$0xff] %v1400_v60  ;;  %v405_v24 = vmul.f32 %v358_v40, %v1347_v6  ;;  %v421_v42 = vmul.f32 %v358_v40, %v1320_v56  ;;  %v414_v5 = vmul.f32 %v1404_v2, %v1320_v56  ;;  %v282_v19 = vadd.f32 %v1302_v48, %v165_v9 }
  0xfb   :  { %v298_v23 = vadd.f32 %v1302_v48, %v181_v10 }
  0xfc   :  { %v1417_v11 = vadd.f32 %v405_v24, %v280_v61  ;;  %v1419_v12 = vadd.f32 %v421_v42, %v296_v62  ;;  %v1421_v13 = vadd.f32 %v414_v5, %v289_v20  ;;  %v183_v62 = vmul.f32 %v1275_v29, %v1307_v50 }
  0xfd   :  { %v366_v17 = vpop.permute.xlu1 %365  ;;  %v1425_v39 = vpop.permute.xlu0 %337  ;;  %v176_v20 = vmul.f32 %v1263_v22, %v1307_v50  ;;  %v462_v5 = vsub.s32 2, %v1280_v31 }
  0xfe   :  { %1880 = vst [vmem:[#allocation13_spill] sm:$0xff] %v1417_v11  ;;  %1881 = vst [vmem:[#allocation14_spill] sm:$0xff] %v1421_v13  ;;  %v407_v26 = vmul.f32 %v366_v17, %v1347_v6  ;;  %v423_v40 = vmul.f32 %v366_v17, %v1320_v56  ;;  %v416_v61 = vmul.f32 %v1425_v39, %v1320_v56 }
  0xff   :  { %v300_v9 = vadd.f32 %v1311_v52, %v183_v62  ;;  %v293_v17 = vadd.f32 %v1313_v53, %v176_v20  ;;  %v164_v13 = vmul.f32 %v1289_v36, %v1292_v37 }
 0x100   :  { %v1436_v24 = vadd.f32 %v407_v26, %v282_v19  ;;  %v1438_v48 = vadd.f32 %v423_v40, %v298_v23  ;;  %v1440_v42 = vadd.f32 %v416_v61, %v291_v44  ;;  %v1452_v23 = vrot.slane %v1273_v27, %v462_v5 }
 0x101   :  { %v374_v10 = vpop.permute.xlu1 %373  ;;  %v1444_v46 = vpop.permute.xlu0 %345  ;;  %v178_v44 = vmul.f32 %v1284_v33, %v1307_v50 }
 0x102   :  { %1882 = vst [vmem:[#allocation15_spill] sm:$0xff] %v1440_v42  ;;  %v409_v29 = vmul.f32 %v374_v10, %v1347_v6  ;;  %v425_v28 = vmul.f32 %v374_v10, %v1320_v56  ;;  %v418_v19 = vmul.f32 %v1444_v46, %v1320_v56 }
 0x103   :  { %v295_v20 = vadd.f32 %v1326_v59, %v178_v44 }
 0x104   :  { %v1457_v52 = vadd.f32 %v409_v29, %v1317_v55  ;;  %v1459_v26 = vadd.f32 %v425_v28, %v300_v9  ;;  %v1461_v40 = vadd.f32 %v418_v19, %v293_v17  ;;  %v180_v55 = vmul.f32 %v1289_v36, %v1307_v50 }
 0x105   :  { %v475_v61 = vpop.permute.xlu1 %474  ;;  %v1463_v62 = vpop.permute.xlu0 %353  ;;  %v281_v17 = vadd.f32 %v1337_v1, %v164_v13 }
 0x106   :  { %1883 = vst [vmem:[#allocation16_spill] sm:$0xff] %v1461_v40  ;;  %v568_v10 = vmul.f32 %v475_v61, %v1452_v23  ;;  %v420_v42 = vmul.f32 %v1463_v62, %v1320_v56  ;;  %v297_v44 = vadd.f32 %v1337_v1, %v180_v55 }
 0x108   :  { %v1474_v28 = vadd.f32 %v568_v10, %v1333_v63  ;;  %v1476_v9 = vadd.f32 %v420_v42, %v295_v20 }
 0x109   :  { %v483_v29 = vpop.permute.xlu1 %482  ;;  %v362_v19 = vpop.permute.xlu0 %361 }
 0x10a   :  { %v570_v40 = vmul.f32 %v483_v29, %v1452_v23  ;;  %v406_v60 = vmul.f32 %v362_v19, %v1347_v6  ;;  %v422_v11 = vmul.f32 %v362_v19, %v1320_v56 }
 0x10c   :  { %v1484_v27 = vadd.f32 %v570_v40, %v1350_v8  ;;  %v1486_v36 = vadd.f32 %v406_v60, %v281_v17  ;;  %v1488_v50 = vadd.f32 %v422_v11, %v297_v44 }
 0x10d   :  { %v1490_v63 = vpop.permute.xlu1 %490  ;;  %v370_v13 = vpop.permute.xlu0 %369 }
 0x10e   :  { %1884 = vst [vmem:[#allocation17_spill] sm:$0xff] %v1488_v50  ;;  %v572_v42 = vmul.f32 %v1490_v63, %v1452_v23  ;;  %v408_v1 = vmul.f32 %v370_v13, %v1347_v6  ;;  %v424_v20 = vmul.f32 %v370_v13, %v1320_v56 }
 0x110   :  { %v1497_v10 = vadd.f32 %v572_v42, %v1365_v38  ;;  %v440_v8 = vadd.f32 %v408_v1, %v1354_v21  ;;  %v1501_v60 = vadd.f32 %v424_v20, %v1356_v34 }
 0x111   :  { %v1503_v11 = vpop.permute.xlu1 %498  ;;  %v378_v40 = vpop.permute.xlu0 %377 }
 0x112   :  { %1885 = vst [vmem:[#allocation18_spill] sm:$0xff] %v1501_v60  ;;  %v574_v55 = vmul.f32 %v1503_v11, %v1452_v23  ;;  %v410_v17 = vmul.f32 %v378_v40, %v1347_v6  ;;  %v426_v19 = vmul.f32 %v378_v40, %v1320_v56 }
 0x114   :  { %v1510_v44 = vadd.f32 %v574_v55, %v1381_v7  ;;  %v442_v38 = vadd.f32 %v410_v17, %v1369_v3  ;;  %v1514_v21 = vadd.f32 %v426_v19, %v1371_v4  ;;  %v1532_v4 = vrot.slane %v1269_v25, %v462_v5 }
 0x115   :  { %v1516_v34 = vpop.permute.xlu1 %506  ;;  %v1518_v13 = vpop.permute.xlu0 %478 }
 0x116   :  { %1886 = vst [vmem:[#allocation19_spill] sm:$0xff] %v1514_v21  ;;  %v576_v42 = vmul.f32 %v1516_v34, %v1452_v23  ;;  %v395_v21 = vmul.f32 %v1324_v58, %v1347_v6 }
 0x118   :  { %v1523_v1 = vadd.f32 %v576_v42, %v1398_v57  ;;  %v153_v42 = vmul.f32 %v1251_v14, %v1292_v37 }
 0x119   :  { %v1525_v20 = vpop.permute.xlu1 %514  ;;  %v1527_v56 = vpop.permute.xlu0 %486 }
 0x11a   :  { %v578_v3 = vmul.f32 %v1525_v20, %v1452_v23  ;;  %v270_v50 = vadd.f32 %v1282_v32, %v153_v42 }
 0x11c   :  { %v1535_v7 = vadd.f32 %v578_v3, %v1419_v12 }
 0x11d   :  { %v523_v40 = vpop.permute.xlu1 %522  ;;  %v1537_v55 = vpop.permute.xlu0 %494 }
 0x11e   :  { %1887 = vst [vmem:[#allocation20_spill] sm:$0xff] %v1535_v7  ;;  %v564_v17 = vmul.f32 %v523_v40, %v1532_v4  ;;  %v580_v57 = vmul.f32 %v523_v40, %v1452_v23  ;;  %v552_v40 = vmul.f32 %v475_v61, %v1532_v4  ;;  %v1888_v7 = vsub.s32 3, %v1280_v31 }
 0x120   :  { %v1547_v5 = vadd.f32 %v564_v17, %v1436_v24  ;;  %v1550_v12 = vadd.f32 %v580_v57, %v1438_v48  ;;  %v1561_v58 = vrot.slane %v1269_v25, %v1888_v7  ;;  %v155_v24 = vmul.f32 %v1277_v30, %v1292_v37 }
 0x121   :  { %v531_v3 = vpop.permute.xlu1 %530  ;;  %v1552_v60 = vpop.permute.xlu0 %502  ;;  %v427_v48 = vadd.f32 %v395_v21, %v270_v50  ;;  %v397_v17 = vmul.f32 %v1335_v0, %v1347_v6 }
 0x122   :  { %v566_v19 = vmul.f32 %v531_v3, %v1532_v4  ;;  %v582_v14 = vmul.f32 %v531_v3, %v1452_v23  ;;  %v272_v25 = vadd.f32 %v1287_v35, %v155_v24  ;;  %v554_v3 = vmul.f32 %v483_v29, %v1532_v4 }
 0x123   :  { %v584_v7 = vadd.f32 %v552_v40, %v427_v48  ;;  %v154_v40 = vmul.f32 %v1253_v15, %v1292_v37  ;;  %v396_v24 = vmul.f32 %v1383_v43, %v1347_v6  ;;  %v156_v15 = vmul.f32 %v1255_v16, %v1292_v37 }
 0x124   :  { %v1568_v32 = vadd.f32 %v566_v19, %v1457_v52  ;;  %v1571_v61 = vadd.f32 %v582_v14, %v1459_v26  ;;  %v429_v50 = vadd.f32 %v397_v17, %v272_v25  ;;  %v398_v43 = vmul.f32 %v1404_v2, %v1347_v6 }
 0x125   :  { %v1573_v57 = vpop.permute.xlu1 %631  ;;  %v1575_v42 = vpop.permute.xlu0 %510  ;;  %v158_v2 = vmul.f32 %v1259_v18, %v1292_v37  ;;  %v557_v18 = vmul.f32 %v1537_v55, %v1532_v4 }
 0x126   :  { %1889 = vst [vmem:[#allocation21_spill] sm:$0xff] %v1571_v61  ;;  %v709_v30 = vmul.f32 %v1573_v57, %v1561_v58  ;;  %v586_v26 = vadd.f32 %v554_v3, %v429_v50  ;;  %v553_v3 = vmul.f32 %v1518_v13, %v1532_v4 }
 0x128   :  { %v741_v0 = vadd.f32 %v709_v30, %v584_v7  ;;  %v271_v7 = vadd.f32 %v1296_v45, %v154_v40 }
 0x129   :  { %v1581_v21 = vpop.permute.xlu1 %639  ;;  %v1583_v52 = vpop.permute.xlu0 %518 }
 0x12a   :  { %v711_v19 = vmul.f32 %v1581_v21, %v1561_v58  ;;  %806 = vperm.xlu1 %1122, %v741_v0   ;;  %v428_v50 = vadd.f32 %v396_v24, %v271_v7  ;;  %v556_v0 = vmul.f32 %v1490_v63, %v1532_v4 }
 0x12c   :  { %v743_v14 = vadd.f32 %v711_v19, %v586_v26  ;;  %v273_v19 = vadd.f32 %v1300_v47, %v156_v15  ;;  %v275_v47 = vadd.f32 %v1304_v49, %v158_v2  ;;  %v588_v7 = vadd.f32 %v556_v0, %v1363_v54 }
 0x12d   :  { %v1587_v61 = vpop.permute.xlu1 %647  ;;  %v1589_v35 = vpop.permute.xlu0 %526  ;;  %v558_v15 = vmul.f32 %v1503_v11, %v1532_v4  ;;  %v402_v49 = vmul.f32 %v1444_v46, %v1347_v6 }
 0x12e   :  { %v565_v29 = vmul.f32 %v1589_v35, %v1532_v4  ;;  %812 = vperm.xlu1 %1122, %v743_v14   ;;  %v585_v14 = vadd.f32 %v553_v3, %v428_v50  ;;  %v430_v63 = vadd.f32 %v398_v43, %v273_v19  ;;  %v713_v40 = vmul.f32 %v1587_v61, %v1561_v58 }
 0x12f   :  { %v160_v43 = vmul.f32 %v1263_v22, %v1292_v37 }
 0x130   :  { %v1597_v48 = vadd.f32 %v565_v29, %v440_v8  ;;  %v555_v29 = vmul.f32 %v1527_v56, %v1532_v4  ;;  %v745_v54 = vadd.f32 %v713_v40, %v588_v7  ;;  %v162_v40 = vmul.f32 %v1284_v33, %v1292_v37 }
 0x131   :  { %v1599_v17 = vpop.permute.xlu1 %655  ;;  %v1601_v25 = vpop.permute.xlu0 %534  ;;  %v277_v11 = vadd.f32 %v1313_v53, %v160_v43  ;;  %v404_v53 = vmul.f32 %v1463_v62, %v1347_v6 }
 0x132   :  { %v567_v30 = vmul.f32 %v1601_v25, %v1532_v4  ;;  %v587_v50 = vadd.f32 %v555_v29, %v430_v63  ;;  %v715_v0 = vmul.f32 %v1599_v17, %v1561_v58  ;;  %v560_v29 = vmul.f32 %v1516_v34, %v1532_v4 }
 0x133   :  { %v590_v63 = vadd.f32 %v558_v15, %v1379_v41  ;;  %v434_v34 = vadd.f32 %v402_v49, %v277_v11  ;;  %v279_v7 = vadd.f32 %v1326_v59, %v162_v40  ;;  %v1890_v49 = vsub.s32 3, %v1280_v31 }
 0x134   :  { %v1612_v8 = vadd.f32 %v567_v30, %v442_v38  ;;  %v400_v38 = vmul.f32 %v1425_v39, %v1347_v6  ;;  %v592_v15 = vadd.f32 %v560_v29, %v1396_v51  ;;  %v561_v6 = vmul.f32 %v1575_v42, %v1532_v4  ;;  %v1892_v29 = vld [vmem:[#allocation13_spill] sm:$0xff] }
 0x135   :  { %v1616_v26 = vpop.permute.xlu1 %663  ;;  %v1618_v45 = vpop.permute.xlu0 %635  ;;  %v436_v43 = vadd.f32 %v404_v53, %v279_v7  ;;  %v569_v11 = vmul.f32 %v1518_v13, %v1452_v23  ;;  %v571_v13 = vmul.f32 %v1527_v56, %v1452_v23 }
 0x136   :  { %v710_v16 = vmul.f32 %v1618_v45, %v1561_v58  ;;  %v432_v19 = vadd.f32 %v400_v38, %v275_v47  ;;  %v559_v38 = vmul.f32 %v1552_v60, %v1532_v4  ;;  %v717_v47 = vmul.f32 %v1616_v26, %v1561_v58 }
 0x138   :  { %v742_v24 = vadd.f32 %v710_v16, %v585_v14  ;;  %v589_v22 = vadd.f32 %v557_v18, %v432_v19  ;;  %v591_v37 = vadd.f32 %v559_v38, %v434_v34  ;;  %v749_v59 = vadd.f32 %v717_v47, %v592_v15 }
 0x139   :  { %v1633_v3 = vpop.permute.xlu1 %671  ;;  %v644_v30 = vpop.permute.xlu0 %643 }
 0x13a   :  { %v712_v39 = vmul.f32 %v644_v30, %v1561_v58  ;;  %809 = vperm.xlu0 %1123, %v742_v24   ;;  %v747_v24 = vadd.f32 %v715_v0, %v590_v63  ;;  %v719_v51 = vmul.f32 %v1633_v3, %v1561_v58 }
 0x13c   :  { %v744_v14 = vadd.f32 %v712_v39, %v587_v50  ;;  %v562_v50 = vmul.f32 %v1525_v20, %v1532_v4 }
 0x13d   :  { %v1649_v16 = vpop.permute.xlu1 %679  ;;  %v652_v2 = vpop.permute.xlu0 %651 }
 0x13e   :  { %v714_v46 = vmul.f32 %v652_v2, %v1561_v58  ;;  %818 = vperm.xlu0 %1123, %v745_v54   ;;  %815 = vperm.xlu1 %1122, %v744_v14   ;;  %v1891_v54 = vld [vmem:[#allocation11_spill] sm:$0xff]  ;;  %v594_v63 = vadd.f32 %v562_v50, %v1892_v29  ;;  %v577_v29 = vmul.f32 %v1575_v42, %v1452_v23 }
 0x13f   :  { %v1680_v0 = vrot.slane %v1891_v54, %v1890_v49  ;;  %v1896_v54 = vld [vmem:[#allocation16_spill] sm:$0xff] }
 0x140   :  { %v746_v41 = vadd.f32 %v714_v46, %v589_v22  ;;  %v593_v22 = vadd.f32 %v561_v6, %v436_v43  ;;  %v751_v46 = vadd.f32 %v719_v51, %v594_v63 }
 0x141   :  { %v1665_v18 = vpop.permute.xlu1 %687  ;;  %v660_v33 = vpop.permute.xlu0 %659  ;;  %v725_v53 = vmul.f32 %v1573_v57, %v1680_v0  ;;  %v728_v7 = vmul.f32 %v644_v30, %v1680_v0  ;;  %v573_v57 = vmul.f32 %v1537_v55, %v1452_v23  ;;  %v575_v55 = vmul.f32 %v1552_v60, %v1452_v23 }
 0x142   :  { %v723_v62 = vmul.f32 %v1665_v18, %v1561_v58  ;;  %v716_v39 = vmul.f32 %v660_v33, %v1561_v58  ;;  %824 = vperm.xlu0 %1123, %v747_v24   ;;  %821 = vperm.xlu1 %1122, %v746_v41   ;;  %v1893_v24 = vld [vmem:[#allocation12_spill] sm:$0xff] }
 0x143   :  { %v601_v47 = vadd.f32 %v569_v11, %v1893_v24  ;;  %v757_v15 = vadd.f32 %v725_v53, %v1474_v28  ;;  %v607_v11 = vadd.f32 %v575_v55, %v1896_v54 }
 0x144   :  { %v1675_v20 = vadd.f32 %v723_v62, %v1568_v32  ;;  %v748_v19 = vadd.f32 %v716_v39, %v591_v37  ;;  %v726_v32 = vmul.f32 %v1618_v45, %v1680_v0  ;;  %v727_v45 = vmul.f32 %v1581_v21, %v1680_v0  ;;  %v1894_v37 = vld [vmem:[#allocation14_spill] sm:$0xff] }
 0x145   :  { %v668_v14 = vpop.permute.xlu0 %667  ;;  %v603_v6 = vadd.f32 %v571_v13, %v1894_v37  ;;  %v730_v39 = vmul.f32 %v652_v2, %v1680_v0  ;;  %v729_v21 = vmul.f32 %v1587_v61, %v1680_v0  ;;  %v732_v2 = vmul.f32 %v660_v33, %v1680_v0 }
 0x146   :  { %v718_v38 = vmul.f32 %v668_v14, %v1561_v58  ;;  %830 = vperm.xlu0 %1123, %v749_v59   ;;  %827 = vperm.xlu1 %1122, %v748_v19   ;;  %v758_v41 = vadd.f32 %v726_v32, %v601_v47  ;;  %v759_v28 = vadd.f32 %v727_v45, %v1484_v27  ;;  %v1895_v59 = vld [vmem:[#allocation15_spill] sm:$0xff]  ;;  %v1897_v32 = vld [vmem:[#allocation20_spill] sm:$0xff] }
 0x147   :  { %v760_v56 = vadd.f32 %v728_v7, %v603_v6  ;;  %v605_v51 = vadd.f32 %v573_v57, %v1895_v59  ;;  %v761_v27 = vadd.f32 %v729_v21, %v1497_v10  ;;  %v731_v61 = vmul.f32 %v1599_v17, %v1680_v0 }
 0x148   :  { %v750_v40 = vadd.f32 %v718_v38, %v593_v22  ;;  %v764_v60 = vadd.f32 %v732_v2, %v607_v11  ;;  %v734_v63 = vmul.f32 %v668_v14, %v1680_v0  ;;  %v609_v10 = vadd.f32 %v577_v29, %v1476_v9 }
 0x149   :  { %v676_v34 = vpop.permute.xlu0 %675  ;;  %v762_v49 = vadd.f32 %v730_v39, %v605_v51  ;;  %v763_v22 = vadd.f32 %v731_v61, %v1510_v44  ;;  %v563_v17 = vmul.f32 %v1583_v52, %v1532_v4  ;;  %v735_v14 = vmul.f32 %v1633_v3, %v1680_v0 }
 0x14a   :  { %836 = vperm.xlu0 %1123, %v751_v46   ;;  %833 = vperm.xlu1 %1122, %v750_v40   ;;  %v766_v33 = vadd.f32 %v734_v63, %v609_v10  ;;  %v720_v42 = vmul.f32 %v676_v34, %v1561_v58  ;;  %v721_v9 = vmul.f32 %v1649_v16, %v1561_v58  ;;  %v1902_v59 = vlaneseq }
 0x14b   :  { %v595_v44 = vadd.f32 %v563_v17, %v1486_v36  ;;  %v767_v46 = vadd.f32 %v735_v14, %v1897_v32  ;;  %v736_v40 = vmul.f32 %v676_v34, %v1680_v0  ;;  %v737_v36 = vmul.f32 %v1649_v16, %v1680_v0  ;;  %v1899_v34 = vld [vmem:[#allocation18_spill] sm:$0xff] }
 0x14c   :  { %v753_v3 = vadd.f32 %v721_v9, %v1547_v5  ;;  %v739_v5 = vmul.f32 %v1665_v18, %v1680_v0  ;;  %v583_v16 = vmul.f32 %v1601_v25, %v1452_v23  ;;  %v1768_v51 = vand.u32 127, %v1902_v59 }
 0x14d   :  { %v684_v50 = vpop.permute.xlu0 %683  ;;  %v752_v4 = vadd.f32 %v720_v42, %v595_v44 }
 0x14e   :  { %v722_v62 = vmul.f32 %v684_v50, %v1561_v58  ;;  %857 = vperm.xlu0 %1123, %v758_v41   ;;  %854 = vperm.xlu1 %1122, %v757_v15   ;;  %v738_v47 = vmul.f32 %v684_v50, %v1680_v0  ;;  %v1901_v15 = vld [vmem:[#allocation19_spill] sm:$0xff]  ;;  %v907_v55 = vadd.s32 4294967288, %v1768_v51  ;;  %v914_v61 = vadd.s32 4294967280, %v1768_v51 }
 0x14f   :  { %v615_v45 = vadd.f32 %v583_v16, %v1901_v15  ;;  %v905_v11 = vsub.s32 %v1768_v51, %v1280_v31  ;;  %v928_v29 = vadd.s32 4294967264, %v1768_v51  ;;  %v942_v42 = vadd.s32 4294967248, %v1768_v51 }
 0x150   :  { %v754_v30 = vadd.f32 %v722_v62, %v1597_v48  ;;  %v910_v2 = vsub.s32 %v907_v55, %v1280_v31  ;;  %v917_v10 = vsub.s32 %v914_v61, %v1280_v31  ;;  %v984_v55 = vadd.s32 4294967200, %v1768_v51 }
 0x151   :  { %v692_v43 = vpop.permute.xlu0 %691  ;;  %v931_v44 = vsub.s32 %v928_v29, %v1280_v31 }
 0x152   :  { %v724_v19 = vmul.f32 %v692_v43, %v1561_v58  ;;  %863 = vperm.xlu0 %1123, %v760_v56   ;;  %860 = vperm.xlu1 %1122, %v759_v28   ;;  %v769_v58 = vadd.f32 %v737_v36, %v1550_v12  ;;  %v740_v12 = vmul.f32 %v692_v43, %v1680_v0  ;;  %v956_v36 = vadd.s32 4294967232, %v1768_v51 }
 0x154   :  { %v756_v48 = vadd.f32 %v724_v19, %v1612_v8  ;;  %v733_v8 = vmul.f32 %v1616_v26, %v1680_v0  ;;  %v579_v26 = vmul.f32 %v1583_v52, %v1452_v23  ;;  %v581_v52 = vmul.f32 %v1589_v35, %v1452_v23  ;;  %v1900_v35 = vld [vmem:[#allocation21_spill] sm:$0xff] }
 0x155   :  { %v771_v7 = vadd.f32 %v739_v5, %v1900_v35  ;;  %v772_v50 = vadd.f32 %v740_v12, %v615_v45  ;;  %v963_v35 = vadd.s32 4294967224, %v1768_v51  ;;  %v970_v12 = vadd.s32 4294967216, %v1768_v51 }
 0x156   :  { %869 = vperm.xlu0 %1123, %v762_v49   ;;  %866 = vperm.xlu1 %1122, %v761_v27   ;;  %v765_v38 = vadd.f32 %v733_v8, %v1523_v1  ;;  %v1898_v1 = vld [vmem:[#allocation17_spill] sm:$0xff]  ;;  %v613_v13 = vadd.f32 %v581_v52, %v1899_v34  ;;  %v959_v45 = vsub.s32 %v956_v36, %v1280_v31 }
 0x157   :  { %v611_v53 = vadd.f32 %v579_v26, %v1898_v1  ;;  %v973_v59 = vsub.s32 %v970_v12, %v1280_v31 }
 0x158   :  { %v770_v41 = vadd.f32 %v738_v47, %v613_v13 }
 0x159   :  { %v768_v24 = vadd.f32 %v736_v40, %v611_v53 }
 0x15a   :  { %875 = vperm.xlu0 %1123, %v764_v60   ;;  %872 = vperm.xlu1 %1122, %v763_v22   ;;  %v935_v22 = vadd.s32 4294967256, %v1768_v51 }
 0x15c   :  { %v938_v32 = vsub.s32 %v935_v22, %v1280_v31 }
 0x15e   :  { %881 = vperm.xlu0 %1123, %v766_v33   ;;  %878 = vperm.xlu1 %1122, %v765_v38  }
 0x162   :  { %839 = vperm.xlu0 %1123, %v752_v4   ;;  %884 = vperm.xlu1 %1122, %v767_v46   ;;  %v949_v46 = vadd.s32 4294967240, %v1768_v51 }
 0x164   :  { %v952_v16 = vsub.s32 %v949_v46, %v1280_v31 }
 0x166   :  { %842 = vperm.xlu0 %1123, %v753_v3   ;;  %887 = vperm.xlu1 %1122, %v768_v24   ;;  %v945_v3 = vsub.s32 %v942_v42, %v1280_v31 }
 0x16a   :  { %845 = vperm.xlu0 %1123, %v754_v30   ;;  %890 = vperm.xlu1 %1122, %v769_v58  }
 0x16e   :  { %848 = vperm.xlu0 %1123, %v1675_v20   ;;  %893 = vperm.xlu1 %1122, %v770_v41  }
 0x172   :  { %851 = vperm.xlu0 %1123, %v756_v48   ;;  %896 = vperm.xlu1 %1122, %v771_v7   ;;  %v921_v48 = vadd.s32 4294967272, %v1768_v51 }
 0x174   :  { %v924_v63 = vsub.s32 %v921_v48, %v1280_v31 }
 0x176   :  { %899 = vperm.xlu1 %1122, %v772_v50  }
 0x1a9   :  { %v807_v37 = vpop.permute.xlu1 %806 }
 0x1aa   :  { %v906_v33 = vrot.slane %v807_v37, %v905_v11 }
 0x1ad   :  { %v813_v18 = vpop.permute.xlu1 %812 }
 0x1ae   :  { %v918_v1 = vrot.slane %v813_v18, %v917_v10 }
 0x1b9   :  { %v810_v6 = vpop.permute.xlu0 %809 }
 0x1ba   :  { %v911_v60 = vrot.slane %v810_v6, %v910_v2 }
 0x1bc   :  { %v913_v9 = vsel %vm912_vm1, %v911_v60, %v906_v33 }
 0x1bd   :  { %v1753_v57 = vpop.permute.xlu0 %818  ;;  %v816_v20 = vpop.permute.xlu1 %815  ;;  %v920_v58 = vsel %vm919_vm2, %v918_v1, %v913_v9 }
 0x1be   :  { %v925_v4 = vrot.slane %v816_v20, %v924_v63  ;;  %v932_v47 = vrot.slane %v1753_v57, %v931_v44 }
 0x1c0   :  { %v927_v5 = vsel %vm926_vm3, %v925_v4, %v920_v58 }
 0x1c1   :  { %v1755_v62 = vpop.permute.xlu0 %824  ;;  %v1757_v23 = vpop.permute.xlu1 %821  ;;  %v934_v6 = vsel %vm933_vm4, %v932_v47, %v927_v5 }
 0x1c2   :  { %v939_v41 = vrot.slane %v1757_v23, %v938_v32  ;;  %v946_v18 = vrot.slane %v1755_v62, %v945_v3 }
 0x1c4   :  { %v941_v23 = vsel %vm940_vm5, %v939_v41, %v934_v6 }
 0x1c5   :  { %v1759_v25 = vpop.permute.xlu0 %830  ;;  %v1761_v56 = vpop.permute.xlu1 %827  ;;  %v948_v48 = vsel %vm947_vm6, %v946_v18, %v941_v23 }
 0x1c6   :  { %v960_v61 = vrot.slane %v1759_v25, %v959_v45 }
 0x1c9   :  { %v1763_v0 = vpop.permute.xlu0 %836  ;;  %v1765_v39 = vpop.permute.xlu1 %833 }
 0x1cd   :  { %v858_v30 = vpop.permute.xlu0 %857  ;;  %v855_v28 = vpop.permute.xlu1 %854 }
 0x1ce   :  { %v1015_v38 = vrot.slane %v855_v28, %v905_v11  ;;  %v1019_v14 = vrot.slane %v858_v30, %v910_v2  ;;  %v953_v30 = vrot.slane %v1761_v56, %v952_v16  ;;  %v966_v28 = vsub.s32 %v963_v35, %v1280_v31 }
 0x1cf   :  { %v991_v2 = vadd.s32 4294967192, %v1768_v51  ;;  %v998_v56 = vadd.s32 4294967184, %v1768_v51 }
 0x1d0   :  { %v1020_v24 = vsel %vm912_vm1, %v1019_v14, %v1015_v38  ;;  %v955_v29 = vsel %vm954_vm7, %v953_v30, %v948_v48  ;;  %v967_v60 = vrot.slane %v1765_v39, %v966_v28  ;;  %v974_v14 = vrot.slane %v1763_v0, %v973_v59 }
 0x1d1   :  { %v864_v21 = vpop.permute.xlu0 %863  ;;  %v861_v43 = vpop.permute.xlu1 %860  ;;  %v1001_v38 = vsub.s32 %v998_v56, %v1280_v31  ;;  %v962_v39 = vsel %vm961_vm8, %v960_v61, %v955_v29 }
 0x1d2   :  { %v1024_v26 = vrot.slane %v861_v43, %v917_v10  ;;  %v1029_v52 = vrot.slane %v864_v21, %v924_v63  ;;  %v977_v21 = vadd.s32 4294967208, %v1768_v51  ;;  %v987_v10 = vsub.s32 %v984_v55, %v1280_v31 }
 0x1d4   :  { %v1025_v34 = vsel %vm919_vm2, %v1024_v26, %v1020_v24  ;;  %v980_v63 = vsub.s32 %v977_v21, %v1280_v31  ;;  %v969_v26 = vsel %vm968_vm9, %v967_v60, %v962_v39 }
 0x1d5   :  { %v1771_v19 = vpop.permute.xlu0 %869  ;;  %v867_v49 = vpop.permute.xlu1 %866  ;;  %v1030_v50 = vsel %vm926_vm3, %v1029_v52, %v1025_v34  ;;  %v976_v24 = vsel %vm975_vm10, %v974_v14, %v969_v26 }
 0x1d6   :  { %v1034_v13 = vrot.slane %v867_v49, %v931_v44  ;;  %v1039_v37 = vrot.slane %v1771_v19, %v938_v32 }
 0x1d8   :  { %v1035_v57 = vsel %vm933_vm4, %v1034_v13, %v1030_v50 }
 0x1d9   :  { %v1775_v27 = vpop.permute.xlu0 %875  ;;  %v1778_v54 = vpop.permute.xlu1 %872  ;;  %v1040_v19 = vsel %vm940_vm5, %v1039_v37, %v1035_v57 }
 0x1da   :  { %v1044_v20 = vrot.slane %v1778_v54, %v945_v3  ;;  %v1049_v49 = vrot.slane %v1775_v27, %v952_v16  ;;  %v1005_v27 = vadd.s32 4294967176, %v1768_v51 }
 0x1dc   :  { %v1045_v54 = vsel %vm947_vm6, %v1044_v20, %v1040_v19 }
 0x1dd   :  { %v1785_v8 = vpop.permute.xlu0 %881  ;;  %v1788_v17 = vpop.permute.xlu1 %878  ;;  %v1050_v25 = vsel %vm954_vm7, %v1049_v49, %v1045_v54 }
 0x1de   :  { %v1054_v11 = vrot.slane %v1788_v17, %v959_v45  ;;  %v1059_v42 = vrot.slane %v1785_v8, %v966_v28  ;;  %v994_v17 = vsub.s32 %v991_v2, %v1280_v31  ;;  %v1008_v8 = vsub.s32 %v1005_v27, %v1280_v31 }
 0x1e0   :  { %v1055_v44 = vsel %vm961_vm8, %v1054_v11, %v1050_v25 }
 0x1e1   :  { %v1795_v40 = vpop.permute.xlu0 %839  ;;  %v1797_v53 = vpop.permute.xlu1 %884  ;;  %v1060_v0 = vsel %vm968_vm9, %v1059_v42, %v1055_v44 }
 0x1e2   :  { %v1064_v51 = vrot.slane %v1797_v53, %v973_v59  ;;  %v981_v9 = vrot.slane %v1795_v40, %v980_v63 }
 0x1e4   :  { %v1065_v40 = vsel %vm975_vm10, %v1064_v51, %v1060_v0  ;;  %v983_v47 = vsel %vm982_vm11, %v981_v9, %v976_v24 }
 0x1e5   :  { %v1809_v7 = vpop.permute.xlu0 %842  ;;  %v1812_v15 = vpop.permute.xlu1 %887 }
 0x1e6   :  { %v1069_v4 = vrot.slane %v1812_v15, %v980_v63  ;;  %v988_v32 = vrot.slane %v1809_v7, %v987_v10 }
 0x1e8   :  { %v1070_v31 = vsel %vm982_vm11, %v1069_v4, %v1065_v40  ;;  %v990_v13 = vsel %vm989_vm12, %v988_v32, %v983_v47 }
 0x1e9   :  { %v846_v43 = vpop.permute.xlu0 %845  ;;  %v891_v62 = vpop.permute.xlu1 %890 }
 0x1ea   :  { %v1074_v46 = vrot.slane %v891_v62, %v987_v10  ;;  %v995_v36 = vrot.slane %v846_v43, %v994_v17 }
 0x1ec   :  { %v1075_v5 = vsel %vm989_vm12, %v1074_v46, %v1070_v31  ;;  %v997_v16 = vsel %vm996_vm13, %v995_v36, %v990_v13 }
 0x1ed   :  { %v849_v22 = vpop.permute.xlu0 %848  ;;  %v894_v33 = vpop.permute.xlu1 %893 }
 0x1ee   :  { %v1079_v53 = vrot.slane %v894_v33, %v994_v17  ;;  %v1002_v52 = vrot.slane %v849_v22, %v1001_v38 }
 0x1f0   :  { %v1080_v35 = vsel %vm996_vm13, %v1079_v53, %v1075_v5  ;;  %v1004_v12 = vsel %vm1003_vm14, %v1002_v52, %v997_v16 }
 0x1f1   :  { %v897_v1 = vpop.permute.xlu1 %896  ;;  %v852_v3 = vpop.permute.xlu0 %851 }
 0x1f2   :  { %v1084_v58 = vrot.slane %v897_v1, %v1001_v38  ;;  %v1009_v34 = vrot.slane %v852_v3, %v1008_v8 }
 0x1f4   :  { %v1085_v15 = vsel %vm1003_vm14, %v1084_v58, %v1080_v35  ;;  %v1011_v45 = vsel %vm1010_vm15, %v1009_v34, %v1004_v12 }
 0x1f5   :  { %v900_v41 = vpop.permute.xlu1 %899 }
 0x1f6   :  { %v1089_v7 = vrot.slane %v900_v41, %v1008_v8 }
 0x1f8   :  { %v1090_v50 = vsel %vm1010_vm15, %v1089_v7, %v1085_v15 }
 0x1f9   :  { %v1092_v37 = vsel %vm1091_vm0, %v1090_v50, %v1011_v45 }
 0x1fa   :  { %1094 = vst [vmem:[#allocation7] sm:$0x3] %v1092_v37 }
 0x1fb   :  { %1181 = shalt.err (!%p1178_p6)
}
 0x1fc   :  { %s1182_s15 = scalar_lea.hbm %s1875_s3, 32 }
 0x1fd   :  { %p1183_p7 = scmp.ne.s32.totalorder %s1875_s3, %s1182_s15  ;;  %p1186_p8 = scmp.lt.u32.totalorder %s1182_s15, %s1875_s3 }
 0x1ff   :  { %p1188_p9 = pnand %p1186_p8, %p1183_p7 }
 0x201   :  { %1191 = shalt.err (!%p1188_p9)
}
 0x202   :  { %1104 = dma.vmem_to_hbm [thread:$0]  %s1102_s11, 32, %s1875_s3, [#allocation4]  }
 0x203   :  { %1196 = dma.done.wait [#allocation4], 32  }
 0x204   :  { %1197 = vsyncadd [#allocation4], 4294967264 }
 0x205   :  { %1108 = vsyncpa [#allocation3], 1 }
 0x206   :  { %1109 = vsyncpa [#allocation6], 1 }
 0x207   :  { %1110 = vsyncpa [#allocation4], 1 }

</bundles_post_ra>
